<compile_context>
chip_gen: v5e
topology: v5e:2x2
jax: 0.10.0
libtpu: 0.0.40
codegen_flags: <defaults>
</compile_context>

<pallas_src>
import jax
import jax.numpy as jnp
from jax.experimental import pallas as pl
from jax.experimental.pallas import tpu as pltpu

_LANE = 128
_SUBLANE = 8
_MIN_TILE_ROWS = 256          # below this, splitting only adds grid-step overhead
_VMEM_TILE_BUDGET = 16 << 20  # target bytes for the double-buffered x + y tiles


def _round_up(n, m):
    return ((n + m - 1) // m) * m


def linear_kernel(x_ref, w_ref, b_ref, o_ref):
    """y = x @ w.T + b for one (TB, F) batch tile, MXU-free.

    x_ref: (TB, F) VMEM  -- batch on sublanes, features on lanes (native layout)
    w_ref: (1, F)  VMEM  -- PyTorch nn.Linear weight row, broadcast over sublanes
    b_ref: (1, 1)  SMEM  -- scalar bias
    o_ref: (TB, 1) VMEM  -- output column
    """
    x = x_ref[...].astype(jnp.float32)
    w = w_ref[...].astype(jnp.float32)
    prod = x * w                                  # VPU broadcast-multiply
    y = jnp.sum(prod, axis=1, keepdims=True)      # XLU cross-lane reduce (F small)
    o_ref[...] = (y + b_ref[0, 0]).astype(o_ref.dtype)


def _pick_batch_tile(B, F):
    """Largest batch tile whose double-buffered VMEM footprint fits the budget."""
    fpad = _round_up(F, _LANE)                    # x tile lane padding (f32)
    row_bytes = (fpad + _LANE) * 4                # one x row + one (lane-padded) y row
    cap = max(_SUBLANE,
              (_VMEM_TILE_BUDGET // (2 * row_bytes)) // _SUBLANE * _SUBLANE)
    if B > cap:
        return cap
    # Whole batch fits one tile: still split in two (when worthwhile) so the
    # "parallel" grid axis gives both v7x TensorCores a tile to stream.
    if B >= 2 * _MIN_TILE_ROWS:
        return min(cap, _round_up(pl.cdiv(B, 2), _SUBLANE))
    return B                                      # single block (== full dim is legal)


def linear_net_forward(x, weight, bias, *, min_pallas_batch=512):
    """Pallas forward of LinearNet: y = x @ weight.T + bias.

    x:      (B, F) float32, native PyTorch layout (no transpose / pad copies)
    weight: (1, F) float32  (PyTorch nn.Linear weight)
    bias:   scalar / (1,) / (1, 1) float32
    returns (B, 1) float32
    """
    B, F = x.shape
    dtype = x.dtype
    w_row = jnp.asarray(weight, dtype).reshape(1, F)
    b_col = jnp.asarray(bias, dtype).reshape(1, 1)

    if B < min_pallas_batch:
        # Fixed pallas_call overhead exceeds the op itself at tiny batches.
        return (x @ w_row.T + b_col).astype(dtype)

    tb = _pick_batch_tile(B, F)
    grid = (pl.cdiv(B, tb),)

    # VMEM actually used: double-buffered x tile + y tile (lane-padded) + weight.
    fpad = _round_up(F, _LANE)
    tb_pad = _round_up(tb, _SUBLANE)
    tile_bytes = tb_pad * (fpad + _LANE) * 4 + _SUBLANE * fpad * 4
    vmem_limit = min(max(2 * tile_bytes + (2 << 20), 4 << 20), 32 << 20)

    cost = pl.CostEstimate(
        flops=2 * B * F,
        transcendentals=0,
        bytes_accessed=B * F * 4 + F * 4 + 4 + B * 4,
    )

    return pl.pallas_call(
        linear_kernel,
        out_shape=jax.ShapeDtypeStruct((B, 1), dtype),
        grid=grid,
        in_specs=[
            pl.BlockSpec((tb, F), lambda i: (i, 0)),             # batch tile of x
            pl.BlockSpec((1, F), lambda i: (0, 0)),              # grid-invariant weight
            pl.BlockSpec(memory_space=pltpu.MemorySpace.SMEM),   # scalar bias
        ],
        out_specs=pl.BlockSpec((tb, 1), lambda i: (i, 0)),
        compiler_params=pltpu.CompilerParams(
            dimension_semantics=("parallel",),   # independent batch tiles (megacore)
            vmem_limit_bytes=vmem_limit,
        ),
        cost_estimate=cost,
    )(x, w_row, b_col)


if __name__ == "__main__":
    key = jax.random.PRNGKey(0)
    kx, kw, kb = jax.random.split(key, 3)

    batch = 1024      # two parallel 512-row tiles -> exercises the pipelined grid
    n_feature = 2     # classic linear-regression example: 2 input features

    x = jax.random.normal(kx, (batch, n_feature), dtype=jnp.float32)

    # nn.Linear default init: U(-1/sqrt(F), 1/sqrt(F)); weight stored as (1, F)
    bound = 1.0 / jnp.sqrt(jnp.float32(n_feature))
    weight = jax.random.uniform(kw, (1, n_feature), dtype=jnp.float32,
                                minval=-bound, maxval=bound)
    bias = jax.random.uniform(kb, (1,), dtype=jnp.float32,
                              minval=-bound, maxval=bound)

    y = linear_net_forward(x, weight, bias)
    y = jax.block_until_ready(y)

    # Reference check against plain JAX
    y_ref = x @ weight.T + bias.reshape(1, 1)
    assert y.shape == (batch, 1)
    assert jnp.allclose(y, y_ref, atol=1e-5, rtol=1e-5)

    print("KERNEL_OK")
</pallas_src>

<mosaic_0001>
module attributes {stable_mosaic.version = 11 : i64} {
  func.func @linear_kernel(%arg0: i32, %arg1: memref<512x2xf32, #tpu.memory_space<vmem>>, %arg2: memref<1x2xf32, #tpu.memory_space<vmem>>, %arg3: memref<1x1xf32, #tpu.memory_space<smem>>, %arg4: memref<512x1xf32, #tpu.memory_space<vmem>>) attributes {dimension_semantics = [#tpu.dimension_semantics<parallel>], iteration_bounds = array<i64: 2>, scalar_prefetch = 0 : i64, scratch_operands = 0 : i64, tpu.core_type = #tpu.core_type<tc>, window_params = [{transform_indices = @transform_0, window_bounds = array<i64: 512, 2>}, {pipeline_mode = #tpu.pipeline_mode<synchronous>, transform_indices = @transform_1, window_bounds = array<i64: 1, 2>}, {transform_indices = @transform_2, window_bounds = array<i64: 1, 1>}, {transform_indices = @transform_3, window_bounds = array<i64: 512, 1>}]} {
    %c0 = arith.constant 0 : index
    %c0_0 = arith.constant 0 : index
    %0 = vector.load %arg1[%c0, %c0_0] : memref<512x2xf32, #tpu.memory_space<vmem>>, vector<512x2xf32>
    %c0_1 = arith.constant 0 : index
    %c0_2 = arith.constant 0 : index
    %1 = vector.load %arg2[%c0_1, %c0_2] : memref<1x2xf32, #tpu.memory_space<vmem>>, vector<1x2xf32>
    %2 = vector.broadcast %1 : vector<1x2xf32> to vector<512x2xf32>
    %3 = arith.mulf %0, %2 : vector<512x2xf32>
    %cst = arith.constant dense<0.000000e+00> : vector<512xf32>
    %4 = vector.multi_reduction <add>, %3, %cst [1] : vector<512x2xf32> to vector<512xf32>
    %5 = vector.shape_cast %4 : vector<512xf32> to vector<512x1xf32>
    %c0_3 = arith.constant 0 : index
    %c0_4 = arith.constant 0 : index
    %6 = memref.load %arg3[%c0_3, %c0_4] : memref<1x1xf32, #tpu.memory_space<smem>>
    %7 = vector.broadcast %6 : f32 to vector<512x1xf32>
    %8 = arith.addf %5, %7 : vector<512x1xf32>
    %c0_5 = arith.constant 0 : index
    %c0_6 = arith.constant 0 : index
    %9 = vector.load %arg4[%c0_5, %c0_6] : memref<512x1xf32, #tpu.memory_space<vmem>>, vector<512x1xf32>
    tpu.vector_store %arg4[%c0_5, %c0_6], %8 {strides = array<i32>} : memref<512x1xf32, #tpu.memory_space<vmem>>, vector<512x1xf32>,
    return
  }
  func.func @transform_0(%arg0: i32) -> (i32, i32) {
    %c0_i32 = arith.constant 0 : i32
    %c0_i32_0 = arith.constant 0 : i32
    return %arg0, %c0_i32 : i32, i32
  }
  func.func @transform_1(%arg0: i32) -> (i32, i32) {
    %c0_i32 = arith.constant 0 : i32
    %c0_i32_0 = arith.constant 0 : i32
    %c0_i32_1 = arith.constant 0 : i32
    return %c0_i32, %c0_i32_0 : i32, i32
  }
  func.func @transform_2(%arg0: i32) -> (i32, i32) {
    %c0_i32 = arith.constant 0 : i32
    %c0_i32_0 = arith.constant 0 : i32
    %c0_i32_1 = arith.constant 0 : i32
    return %c0_i32, %c0_i32_0 : i32, i32
  }
  func.func @transform_3(%arg0: i32) -> (i32, i32) {
    %c0_i32 = arith.constant 0 : i32
    %c0_i32_0 = arith.constant 0 : i32
    return %arg0, %c0_i32 : i32, i32
  }
}

</mosaic_0001>

<bundles_post_ra>
// kernel: tpu_custom_call.1
= control target key start
LH: loop header
LB: loop body
LE: loop exit
PB: predicated region body
PF: predicated region fallthrough
CT: control target
= control target key end

     0   :  { %s738_s14 = smov 0   ;;  %s1157_s0 = inlined_call_operand.vmem [shape: f32[1024,2], index: 0, kind: input, shape index: {}]   ;;  %s1158_s1 = inlined_call_operand.vmem [shape: f32[1,2], index: 1, kind: input, shape index: {}]   ;;  %s1159_s2 = inlined_call_operand.<no memory space> [shape: f32[1,1], index: 2, kind: input, shape index: {}]   ;;  %s1160_s3 = inlined_call_operand.vmem [shape: f32[1024,1], index: 3, kind: output, shape index: {}]  }
   0x1   :  { %8 = sst [smem:[#allocation2]] %s1159_s2 }
   0x2 LB: > { %s687_s15 = sadd.s32 4294967295, %s713_s14   ;;  %p691_p0 = scmp.ge.s32.totalorder %s713_s14, 1  ;;  %s713_s14 = sphi %s738_s14, %s14_s14  }
   0x3   : > { %p139_p1 = scmp.lt.s32.totalorder %s713_s14, 3 }
   0x5   : > { %p140_p2 = pnand %p691_p0, %p139_p1 }
   0x6   : > { %s692_s16 = sshll.u32 (!%p140_p2), %s687_s15, 6  ;;  %s500_s22 = sld [smem:[#allocation2]] (!%p140_p2) }
   0x7   : > { %143 = sbr.rel (%p140_p2) target bundleno = 306 (0x132), region = 32  ;;  %p164_p3 = scmp.lt.s32.totalorder (!%p140_p2), %s692_s16, 127 }
   0xc   : > { %s1162_s16 = smov (!%p164_p3, %s692_s16), 127  ;;  %v751_v0 = vld [vmem:[%s1158_s1] ss:$0 sm:$0xff]  ;;  %vm307_vm0 = vcmask 15360   ;;  %vm566_vm1 = vcmask 7168  }
   0xd   : > { %s693_s18 = sshll.u32 %s1162_s16, 3 }
   0xe   : > { %s759_s21 = scalar_lea.vmem %s1157_s0, %s693_s18  ;;  %s909_s25 = scalar_lea.vmem %s1160_s3, %s693_s18 }
   0xf   : > { %v175_v1 = vld [vmem:[%s759_s21] sm:$0xff]  ;;  %v177_v3 = vld [vmem:[%s759_s21 + $0x10] sm:$0xff]  ;;  %v176_v7 = vld [vmem:[%s759_s21 + $0x8] sm:$0xff] }
  0x10   : > { %v179_v2 = vld [vmem:[%s759_s21 + $0x20] sm:$0xff]  ;;  %v243_v4 = vmul.f32 %v751_v0, %v175_v1  ;;  %v245_v6 = vmul.f32 %v751_v0, %v177_v3  ;;  %v180_v8 = vld [vmem:[%s759_s21 + $0x28] sm:$0xff]  ;;  %v178_v12 = vld [vmem:[%s759_s21 + $0x18] sm:$0xff]  ;;  %v244_v13 = vmul.f32 %v751_v0, %v176_v7 }
  0x11   : > { %v247_v5 = vmul.f32 %v751_v0, %v179_v2  ;;  %v248_v14 = vmul.f32 %v751_v0, %v180_v8  ;;  %v246_v15 = vmul.f32 %v751_v0, %v178_v12  ;;  %v181_v19 = vld [vmem:[%s759_s21 + $0x30] sm:$0xff]  ;;  %v183_v20 = vld [vmem:[%s759_s21 + $0x40] sm:$0xff]  ;;  %v182_v21 = vld [vmem:[%s759_s21 + $0x38] sm:$0xff] }
  0x12   : > { %v308_v9 = vsel %vm307_vm0, %v243_v4, 0.0  ;;  %v314_v11 = vsel %vm307_vm0, %v245_v6, 0.0  ;;  %v311_v16 = vsel %vm307_vm0, %v244_v13, 0.0  ;;  %v249_v22 = vmul.f32 %v751_v0, %v181_v19  ;;  %v184_v28 = vld [vmem:[%s759_s21 + $0x48] sm:$0xff]  ;;  %v186_v29 = vld [vmem:[%s759_s21 + $0x58] sm:$0xff]  ;;  %v185_v30 = vld [vmem:[%s759_s21 + $0x50] sm:$0xff] }
  0x13   : > { %v320_v10 = vsel %vm307_vm0, %v247_v5, 0.0  ;;  %309 = vadd.xlane.f32.xlu0 %v308_v9  ;;  %315 = vadd.xlane.f32.xlu1 %v314_v11  ;;  %v323_v17 = vsel %vm307_vm0, %v248_v14, 0.0  ;;  %v317_v18 = vsel %vm307_vm0, %v246_v15, 0.0  ;;  %v251_v23 = vmul.f32 %v751_v0, %v183_v20  ;;  %v187_v37 = vld [vmem:[%s759_s21 + $0x60] sm:$0xff]  ;;  %v189_v38 = vld [vmem:[%s759_s21 + $0x70] sm:$0xff]  ;;  %v188_v39 = vld [vmem:[%s759_s21 + $0x68] sm:$0xff] }
  0x14   : > { %321 = vadd.xlane.f32.xlu2 %v320_v10  ;;  %v250_v24 = vmul.f32 %v751_v0, %v182_v21  ;;  %v326_v25 = vsel %vm307_vm0, %v249_v22, 0.0  ;;  %v252_v31 = vmul.f32 %v751_v0, %v184_v28  ;;  %v254_v32 = vmul.f32 %v751_v0, %v186_v29  ;;  %v190_v46 = vld [vmem:[%s759_s21 + $0x78] sm:$0xff]  ;;  %v192_v47 = vld [vmem:[%s759_s21 + $0x88] sm:$0xff]  ;;  %v191_v48 = vld [vmem:[%s759_s21 + $0x80] sm:$0xff] }
  0x15   : > { %v332_v26 = vsel %vm307_vm0, %v251_v23, 0.0  ;;  %v253_v33 = vmul.f32 %v751_v0, %v185_v30  ;;  %v255_v40 = vmul.f32 %v751_v0, %v187_v37  ;;  %v257_v41 = vmul.f32 %v751_v0, %v189_v38  ;;  %v193_v55 = vld [vmem:[%s759_s21 + $0x90] sm:$0xff]  ;;  %v195_v56 = vld [vmem:[%s759_s21 + $0xa0] sm:$0xff]  ;;  %v194_v57 = vld [vmem:[%s759_s21 + $0x98] sm:$0xff] }
  0x16   : > { %v329_v27 = vsel %vm307_vm0, %v250_v24, 0.0  ;;  %v335_v34 = vsel %vm307_vm0, %v252_v31, 0.0  ;;  %v341_v35 = vsel %vm307_vm0, %v254_v32, 0.0  ;;  %v256_v42 = vmul.f32 %v751_v0, %v188_v39  ;;  %v196_v1 = vld [vmem:[%s759_s21 + $0xa8] sm:$0xff]  ;;  %v198_v2 = vld [vmem:[%s759_s21 + $0xb8] sm:$0xff]  ;;  %v197_v3 = vld [vmem:[%s759_s21 + $0xb0] sm:$0xff] }
  0x17   : > { %v338_v36 = vsel %vm307_vm0, %v253_v33, 0.0  ;;  %v344_v43 = vsel %vm307_vm0, %v255_v40, 0.0  ;;  %v350_v44 = vsel %vm307_vm0, %v257_v41, 0.0  ;;  %v258_v49 = vmul.f32 %v751_v0, %v190_v46  ;;  %v199_v10 = vld [vmem:[%s759_s21 + $0xc0] sm:$0xff]  ;;  %v201_v11 = vld [vmem:[%s759_s21 + $0xd0] sm:$0xff]  ;;  %v200_v12 = vld [vmem:[%s759_s21 + $0xc8] sm:$0xff] }
  0x18   : > { %v347_v45 = vsel %vm307_vm0, %v256_v42, 0.0  ;;  %v260_v50 = vmul.f32 %v751_v0, %v192_v47  ;;  %v259_v51 = vmul.f32 %v751_v0, %v191_v48  ;;  %v261_v58 = vmul.f32 %v751_v0, %v193_v55  ;;  %v202_v19 = vld [vmem:[%s759_s21 + $0xd8] sm:$0xff]  ;;  %v204_v20 = vld [vmem:[%s759_s21 + $0xe8] sm:$0xff]  ;;  %v203_v21 = vld [vmem:[%s759_s21 + $0xe0] sm:$0xff] }
  0x19   : > { %v353_v52 = vsel %vm307_vm0, %v258_v49, 0.0  ;;  %v263_v59 = vmul.f32 %v751_v0, %v195_v56  ;;  %v262_v60 = vmul.f32 %v751_v0, %v194_v57  ;;  %v264_v4 = vmul.f32 %v751_v0, %v196_v1  ;;  %v205_v28 = vld [vmem:[%s759_s21 + $0xf0] sm:$0xff]  ;;  %v207_v29 = vld [vmem:[%s759_s21 + $0x100] sm:$0xff]  ;;  %v206_v30 = vld [vmem:[%s759_s21 + $0xf8] sm:$0xff] }
  0x1a   : > { %v359_v53 = vsel %vm307_vm0, %v260_v50, 0.0  ;;  %v356_v54 = vsel %vm307_vm0, %v259_v51, 0.0  ;;  %v362_v61 = vsel %vm307_vm0, %v261_v58, 0.0  ;;  %v266_v5 = vmul.f32 %v751_v0, %v198_v2  ;;  %v208_v37 = vld [vmem:[%s759_s21 + $0x108] sm:$0xff]  ;;  %v210_v38 = vld [vmem:[%s759_s21 + $0x118] sm:$0xff]  ;;  %v209_v39 = vld [vmem:[%s759_s21 + $0x110] sm:$0xff] }
  0x1b   : > { %312 = vadd.xlane.f32.xlu0 %v311_v16  ;;  %318 = vadd.xlane.f32.xlu1 %v317_v18  ;;  %v368_v62 = vsel %vm307_vm0, %v263_v59, 0.0  ;;  %v365_v63 = vsel %vm307_vm0, %v262_v60, 0.0  ;;  %v265_v6 = vmul.f32 %v751_v0, %v197_v3  ;;  %v371_v7 = vsel %vm307_vm0, %v264_v4, 0.0  ;;  %v211_v46 = vld [vmem:[%s759_s21 + $0x120] sm:$0xff]  ;;  %v213_v47 = vld [vmem:[%s759_s21 + $0x130] sm:$0xff]  ;;  %v212_v48 = vld [vmem:[%s759_s21 + $0x128] sm:$0xff] }
  0x1c   : > { %324 = vadd.xlane.f32.xlu2 %v323_v17  ;;  %v377_v8 = vsel %vm307_vm0, %v266_v5, 0.0  ;;  %v267_v13 = vmul.f32 %v751_v0, %v199_v10  ;;  %v269_v14 = vmul.f32 %v751_v0, %v201_v11  ;;  %v268_v15 = vmul.f32 %v751_v0, %v200_v12  ;;  %v214_v55 = vld [vmem:[%s759_s21 + $0x138] sm:$0xff]  ;;  %v216_v56 = vld [vmem:[%s759_s21 + $0x148] sm:$0xff]  ;;  %v215_v57 = vld [vmem:[%s759_s21 + $0x140] sm:$0xff] }
  0x1d   : > { %v374_v9 = vsel %vm307_vm0, %v265_v6, 0.0  ;;  %v270_v22 = vmul.f32 %v751_v0, %v202_v19  ;;  %v272_v23 = vmul.f32 %v751_v0, %v204_v20  ;;  %v271_v24 = vmul.f32 %v751_v0, %v203_v21  ;;  %v217_v1 = vld [vmem:[%s759_s21 + $0x150] sm:$0xff]  ;;  %v219_v2 = vld [vmem:[%s759_s21 + $0x160] sm:$0xff]  ;;  %v218_v3 = vld [vmem:[%s759_s21 + $0x158] sm:$0xff] }
  0x1e   : > { %v380_v16 = vsel %vm307_vm0, %v267_v13, 0.0  ;;  %v386_v17 = vsel %vm307_vm0, %v269_v14, 0.0  ;;  %v383_v18 = vsel %vm307_vm0, %v268_v15, 0.0  ;;  %v273_v31 = vmul.f32 %v751_v0, %v205_v28  ;;  %v220_v10 = vld [vmem:[%s759_s21 + $0x168] sm:$0xff]  ;;  %v222_v11 = vld [vmem:[%s759_s21 + $0x178] sm:$0xff]  ;;  %v221_v12 = vld [vmem:[%s759_s21 + $0x170] sm:$0xff] }
  0x1f   : > { %v275_v32 = vmul.f32 %v751_v0, %v207_v29  ;;  %v274_v33 = vmul.f32 %v751_v0, %v206_v30  ;;  %v276_v40 = vmul.f32 %v751_v0, %v208_v37  ;;  %v278_v41 = vmul.f32 %v751_v0, %v210_v38  ;;  %v224_v28 = vld [vmem:[%s759_s21 + $0x188] sm:$0xff] }
  0x20   : > { %v277_v42 = vmul.f32 %v751_v0, %v209_v39  ;;  %v279_v49 = vmul.f32 %v751_v0, %v211_v46  ;;  %v281_v50 = vmul.f32 %v751_v0, %v213_v47  ;;  %v280_v51 = vmul.f32 %v751_v0, %v212_v48 }
  0x21   : > { %v282_v58 = vmul.f32 %v751_v0, %v214_v55  ;;  %v284_v59 = vmul.f32 %v751_v0, %v216_v56  ;;  %v283_v60 = vmul.f32 %v751_v0, %v215_v57  ;;  %v285_v4 = vmul.f32 %v751_v0, %v217_v1  ;;  %v229_v56 = vld [vmem:[%s759_s21 + $0x1b0] sm:$0xff]  ;;  %v231_v57 = vld [vmem:[%s759_s21 + $0x1c0] sm:$0xff] }
  0x22   : > { %v287_v5 = vmul.f32 %v751_v0, %v219_v2  ;;  %v286_v6 = vmul.f32 %v751_v0, %v218_v3  ;;  %v899_v13 = vstv %s500_s22  ;;  %v288_v14 = vmul.f32 %v751_v0, %v220_v10  ;;  %v233_v10 = vld [vmem:[%s759_s21 + $0x1d0] sm:$0xff] }
  0x23   : > { %327 = vadd.xlane.f32.xlu0 %v326_v25  ;;  %330 = vadd.xlane.f32.xlu1 %v329_v27  ;;  %v389_v25 = vsel %vm307_vm0, %v270_v22, 0.0  ;;  %v392_v27 = vsel %vm307_vm0, %v271_v24, 0.0  ;;  %v290_v15 = vmul.f32 %v751_v0, %v222_v11 }
  0x24   : > { %333 = vadd.xlane.f32.xlu2 %v332_v26  ;;  %v395_v26 = vsel %vm307_vm0, %v272_v23, 0.0  ;;  %v443_v22 = vsel %vm307_vm0, %v288_v14, 0.0  ;;  %v301_v14 = vmul.f32 %v751_v0, %v233_v10 }
  0x25   : > { %v449_v24 = vsel %vm307_vm0, %v290_v15, 0.0 }
  0x2b   : > { %336 = vadd.xlane.f32.xlu0 %v335_v34  ;;  %339 = vadd.xlane.f32.xlu1 %v338_v36  ;;  %v398_v34 = vsel %vm307_vm0, %v273_v31, 0.0  ;;  %v401_v36 = vsel %vm307_vm0, %v274_v33, 0.0  ;;  %v292_v31 = vmul.f32 %v751_v0, %v224_v28 }
  0x2c   : > { %342 = vadd.xlane.f32.xlu2 %v341_v35  ;;  %v404_v35 = vsel %vm307_vm0, %v275_v32, 0.0 }
  0x33   : > { %345 = vadd.xlane.f32.xlu0 %v344_v43  ;;  %348 = vadd.xlane.f32.xlu1 %v347_v45  ;;  %v407_v43 = vsel %vm307_vm0, %v276_v40, 0.0  ;;  %v410_v45 = vsel %vm307_vm0, %v277_v42, 0.0  ;;  %v455_v40 = vsel %vm307_vm0, %v292_v31, 0.0  ;;  %v228_v42 = vld [vmem:[%s759_s21 + $0x1a8] sm:$0xff] }
  0x34   : > { %351 = vadd.xlane.f32.xlu2 %v350_v44  ;;  %v413_v44 = vsel %vm307_vm0, %v278_v41, 0.0  ;;  %v226_v41 = vld [vmem:[%s759_s21 + $0x198] sm:$0xff] }
  0x3b   : > { %354 = vadd.xlane.f32.xlu0 %v353_v52  ;;  %357 = vadd.xlane.f32.xlu1 %v356_v54  ;;  %v416_v52 = vsel %vm307_vm0, %v279_v49, 0.0  ;;  %v419_v54 = vsel %vm307_vm0, %v280_v51, 0.0 }
  0x3c   : > { %360 = vadd.xlane.f32.xlu2 %v359_v53  ;;  %v422_v53 = vsel %vm307_vm0, %v281_v50, 0.0 }
  0x43   : > { %363 = vadd.xlane.f32.xlu0 %v362_v61  ;;  %366 = vadd.xlane.f32.xlu1 %v365_v63  ;;  %v425_v61 = vsel %vm307_vm0, %v282_v58, 0.0  ;;  %v428_v63 = vsel %vm307_vm0, %v283_v60, 0.0  ;;  %v230_v58 = vld [vmem:[%s759_s21 + $0x1b8] sm:$0xff]  ;;  %v299_v60 = vmul.f32 %v751_v0, %v231_v57 }
  0x44   : > { %369 = vadd.xlane.f32.xlu2 %v368_v62  ;;  %v431_v62 = vsel %vm307_vm0, %v284_v59, 0.0  ;;  %v297_v59 = vmul.f32 %v751_v0, %v229_v56 }
  0x4b   : > { %372 = vadd.xlane.f32.xlu0 %v371_v7  ;;  %375 = vadd.xlane.f32.xlu1 %v374_v9  ;;  %v434_v7 = vsel %vm307_vm0, %v285_v4, 0.0  ;;  %v437_v9 = vsel %vm307_vm0, %v286_v6, 0.0  ;;  %v470_v4 = vsel %vm307_vm0, %v297_v59, 0.0  ;;  %v476_v6 = vsel %vm307_vm0, %v299_v60, 0.0 }
  0x4c   : > { %378 = vadd.xlane.f32.xlu2 %v377_v8  ;;  %v440_v8 = vsel %vm307_vm0, %v287_v5, 0.0 }
  0x53   : > { %381 = vadd.xlane.f32.xlu0 %v380_v16  ;;  %384 = vadd.xlane.f32.xlu1 %v383_v18  ;;  %v289_v16 = vmul.f32 %v751_v0, %v221_v12 }
  0x54   : > { %387 = vadd.xlane.f32.xlu2 %v386_v17 }
  0x5b   : > { %390 = vadd.xlane.f32.xlu0 %v389_v25  ;;  %393 = vadd.xlane.f32.xlu1 %v392_v27  ;;  %v446_v25 = vsel %vm307_vm0, %v289_v16, 0.0  ;;  %v225_v27 = vld [vmem:[%s759_s21 + $0x190] sm:$0xff] }
  0x5c   : > { %396 = vadd.xlane.f32.xlu2 %v395_v26  ;;  %v223_v26 = vld [vmem:[%s759_s21 + $0x180] sm:$0xff]  ;;  %v293_v30 = vmul.f32 %v751_v0, %v225_v27 }
  0x5d   : > { %v291_v29 = vmul.f32 %v751_v0, %v223_v26  ;;  %v236_v26 = vld [vmem:[%s759_s21 + $0x1e8] sm:$0xff] }
  0x5e   : > { %v458_v39 = vsel %vm307_vm0, %v293_v30, 0.0 }
  0x5f   : > { %v452_v37 = vsel %vm307_vm0, %v291_v29, 0.0  ;;  %v304_v29 = vmul.f32 %v751_v0, %v236_v26 }
  0x63   : > { %399 = vadd.xlane.f32.xlu0 %v398_v34  ;;  %402 = vadd.xlane.f32.xlu1 %v401_v36 }
  0x64   : > { %405 = vadd.xlane.f32.xlu2 %v404_v35 }
  0x6b   : > { %408 = vadd.xlane.f32.xlu0 %v407_v43  ;;  %411 = vadd.xlane.f32.xlu1 %v410_v45  ;;  %v227_v43 = vld [vmem:[%s759_s21 + $0x1a0] sm:$0xff]  ;;  %v296_v45 = vmul.f32 %v751_v0, %v228_v42 }
  0x6c   : > { %414 = vadd.xlane.f32.xlu2 %v413_v44  ;;  %v294_v44 = vmul.f32 %v751_v0, %v226_v41  ;;  %v295_v46 = vmul.f32 %v751_v0, %v227_v43 }
  0x6e   : > { %v464_v55 = vsel %vm307_vm0, %v295_v46, 0.0 }
  0x73   : > { %417 = vadd.xlane.f32.xlu0 %v416_v52  ;;  %420 = vadd.xlane.f32.xlu1 %v419_v54  ;;  %v461_v52 = vsel %vm307_vm0, %v294_v44, 0.0  ;;  %v467_v54 = vsel %vm307_vm0, %v296_v45, 0.0 }
  0x74   : > { %423 = vadd.xlane.f32.xlu2 %v422_v53 }
  0x7b   : > { %426 = vadd.xlane.f32.xlu0 %v425_v61  ;;  %429 = vadd.xlane.f32.xlu1 %v428_v63  ;;  %v298_v61 = vmul.f32 %v751_v0, %v230_v58 }
  0x7c   : > { %432 = vadd.xlane.f32.xlu2 %v431_v62 }
  0x83   : > { %435 = vadd.xlane.f32.xlu0 %v434_v7  ;;  %438 = vadd.xlane.f32.xlu1 %v437_v9  ;;  %v473_v7 = vsel %vm307_vm0, %v298_v61, 0.0  ;;  %v234_v9 = vld [vmem:[%s759_s21 + $0x1d8] sm:$0xff] }
  0x84   : > { %441 = vadd.xlane.f32.xlu2 %v440_v8  ;;  %v232_v8 = vld [vmem:[%s759_s21 + $0x1c8] sm:$0xff]  ;;  %v302_v12 = vmul.f32 %v751_v0, %v234_v9 }
  0x85   : > { %v300_v11 = vmul.f32 %v751_v0, %v232_v8 }
  0x86   : > { %v310_v17 = vpop.xlane.xlu0 %309  ;;  %v316_v21 = vpop.xlane.xlu1 %315 }
  0x87   : > { %v322_v18 = vpop.xlane.xlu2 %321  ;;  %v502_v19 = vadd.f32 %v899_v13, %v310_v17  ;;  %v504_v23 = vadd.f32 %v899_v13, %v316_v21 }
  0x88   : > { %v506_v20 = vadd.f32 %v899_v13, %v322_v18 }
  0x89   : > { %567 = vst.msk [vmem:[%s909_s25] sm:$0xff] %vm566_vm1, %v502_v19 }
  0x8a   : > { %571 = vst.msk [vmem:[%s909_s25 + $0x20] sm:$0xff] %vm566_vm1, %v506_v20  ;;  %v479_v20 = vsel %vm307_vm0, %v300_v11, 0.0 }
  0x8b   : > { %444 = vadd.xlane.f32.xlu0 %v443_v22  ;;  %569 = vst.msk [vmem:[%s909_s25 + $0x10] sm:$0xff] %vm566_vm1, %v504_v23  ;;  %447 = vadd.xlane.f32.xlu1 %v446_v25  ;;  %v485_v22 = vsel %vm307_vm0, %v302_v12, 0.0  ;;  %v482_v23 = vsel %vm307_vm0, %v301_v14, 0.0  ;;  %v237_v25 = vld [vmem:[%s759_s21 + $0x1f0] sm:$0xff] }
  0x8c   : > { %450 = vadd.xlane.f32.xlu2 %v449_v24  ;;  %v235_v24 = vld [vmem:[%s759_s21 + $0x1e0] sm:$0xff]  ;;  %v305_v28 = vmul.f32 %v751_v0, %v237_v25 }
  0x8d   : > { %v303_v27 = vmul.f32 %v751_v0, %v235_v24 }
  0x8e   : > { %v313_v32 = vpop.xlane.xlu0 %312  ;;  %v319_v36 = vpop.xlane.xlu1 %318 }
  0x8f   : > { %v325_v33 = vpop.xlane.xlu2 %324  ;;  %v503_v34 = vadd.f32 %v899_v13, %v313_v32  ;;  %v505_v38 = vadd.f32 %v899_v13, %v319_v36 }
  0x90   : > { %v507_v35 = vadd.f32 %v899_v13, %v325_v33 }
  0x91   : > { %568 = vst.msk [vmem:[%s909_s25 + $0x8] sm:$0xff] %vm566_vm1, %v503_v34 }
  0x92   : > { %572 = vst.msk [vmem:[%s909_s25 + $0x28] sm:$0xff] %vm566_vm1, %v507_v35  ;;  %v488_v35 = vsel %vm307_vm0, %v303_v27, 0.0 }
  0x93   : > { %453 = vadd.xlane.f32.xlu0 %v452_v37  ;;  %570 = vst.msk [vmem:[%s909_s25 + $0x18] sm:$0xff] %vm566_vm1, %v505_v38  ;;  %456 = vadd.xlane.f32.xlu1 %v455_v40  ;;  %v494_v37 = vsel %vm307_vm0, %v305_v28, 0.0  ;;  %v491_v38 = vsel %vm307_vm0, %v304_v29, 0.0 }
  0x94   : > { %459 = vadd.xlane.f32.xlu2 %v458_v39  ;;  %v238_v39 = vld [vmem:[%s759_s21 + $0x1f8] sm:$0xff] }
  0x95   : > { %v306_v40 = vmul.f32 %v751_v0, %v238_v39 }
  0x96   : > { %v328_v47 = vpop.xlane.xlu0 %327  ;;  %v331_v51 = vpop.xlane.xlu1 %330 }
  0x97   : > { %v334_v48 = vpop.xlane.xlu2 %333  ;;  %v508_v49 = vadd.f32 %v899_v13, %v328_v47  ;;  %v509_v53 = vadd.f32 %v899_v13, %v331_v51  ;;  %v497_v46 = vsel %vm307_vm0, %v306_v40, 0.0 }
  0x98   : > { %v510_v50 = vadd.f32 %v899_v13, %v334_v48 }
  0x99   : > { %573 = vst.msk [vmem:[%s909_s25 + $0x30] sm:$0xff] %vm566_vm1, %v508_v49 }
  0x9a   : > { %575 = vst.msk [vmem:[%s909_s25 + $0x40] sm:$0xff] %vm566_vm1, %v510_v50 }
  0x9b   : > { %462 = vadd.xlane.f32.xlu0 %v461_v52  ;;  %574 = vst.msk [vmem:[%s909_s25 + $0x38] sm:$0xff] %vm566_vm1, %v509_v53  ;;  %465 = vadd.xlane.f32.xlu1 %v464_v55 }
  0x9c   : > { %468 = vadd.xlane.f32.xlu2 %v467_v54 }
  0x9e   : > { %v337_v62 = vpop.xlane.xlu0 %336  ;;  %v340_v3 = vpop.xlane.xlu1 %339 }
  0x9f   : > { %v343_v63 = vpop.xlane.xlu2 %342  ;;  %v511_v1 = vadd.f32 %v899_v13, %v337_v62  ;;  %v512_v5 = vadd.f32 %v899_v13, %v340_v3 }
  0xa0   : > { %v513_v2 = vadd.f32 %v899_v13, %v343_v63 }
  0xa1   : > { %576 = vst.msk [vmem:[%s909_s25 + $0x48] sm:$0xff] %vm566_vm1, %v511_v1 }
  0xa2   : > { %578 = vst.msk [vmem:[%s909_s25 + $0x58] sm:$0xff] %vm566_vm1, %v513_v2 }
  0xa3   : > { %471 = vadd.xlane.f32.xlu0 %v470_v4  ;;  %577 = vst.msk [vmem:[%s909_s25 + $0x50] sm:$0xff] %vm566_vm1, %v512_v5  ;;  %474 = vadd.xlane.f32.xlu1 %v473_v7 }
  0xa4   : > { %477 = vadd.xlane.f32.xlu2 %v476_v6 }
  0xa6   : > { %v346_v15 = vpop.xlane.xlu0 %345  ;;  %v349_v19 = vpop.xlane.xlu1 %348 }
  0xa7   : > { %v352_v16 = vpop.xlane.xlu2 %351  ;;  %v514_v17 = vadd.f32 %v899_v13, %v346_v15  ;;  %v515_v21 = vadd.f32 %v899_v13, %v349_v19 }
  0xa8   : > { %v516_v18 = vadd.f32 %v899_v13, %v352_v16 }
  0xa9   : > { %579 = vst.msk [vmem:[%s909_s25 + $0x60] sm:$0xff] %vm566_vm1, %v514_v17 }
  0xaa   : > { %581 = vst.msk [vmem:[%s909_s25 + $0x70] sm:$0xff] %vm566_vm1, %v516_v18 }
  0xab   : > { %480 = vadd.xlane.f32.xlu0 %v479_v20  ;;  %580 = vst.msk [vmem:[%s909_s25 + $0x68] sm:$0xff] %vm566_vm1, %v515_v21  ;;  %483 = vadd.xlane.f32.xlu1 %v482_v23 }
  0xac   : > { %486 = vadd.xlane.f32.xlu2 %v485_v22 }
  0xae   : > { %v355_v30 = vpop.xlane.xlu0 %354  ;;  %v358_v34 = vpop.xlane.xlu1 %357 }
  0xaf   : > { %v361_v31 = vpop.xlane.xlu2 %360  ;;  %v517_v32 = vadd.f32 %v899_v13, %v355_v30  ;;  %v518_v36 = vadd.f32 %v899_v13, %v358_v34 }
  0xb0   : > { %v519_v33 = vadd.f32 %v899_v13, %v361_v31 }
  0xb1   : > { %582 = vst.msk [vmem:[%s909_s25 + $0x78] sm:$0xff] %vm566_vm1, %v517_v32 }
  0xb2   : > { %584 = vst.msk [vmem:[%s909_s25 + $0x88] sm:$0xff] %vm566_vm1, %v519_v33 }
  0xb3   : > { %489 = vadd.xlane.f32.xlu0 %v488_v35  ;;  %583 = vst.msk [vmem:[%s909_s25 + $0x80] sm:$0xff] %vm566_vm1, %v518_v36  ;;  %492 = vadd.xlane.f32.xlu1 %v491_v38 }
  0xb4   : > { %495 = vadd.xlane.f32.xlu2 %v494_v37 }
  0xb6   : > { %v364_v41 = vpop.xlane.xlu0 %363  ;;  %v367_v45 = vpop.xlane.xlu1 %366 }
  0xb7   : > { %v370_v42 = vpop.xlane.xlu2 %369  ;;  %v520_v43 = vadd.f32 %v899_v13, %v364_v41  ;;  %v521_v47 = vadd.f32 %v899_v13, %v367_v45 }
  0xb8   : > { %v522_v44 = vadd.f32 %v899_v13, %v370_v42 }
  0xb9   : > { %585 = vst.msk [vmem:[%s909_s25 + $0x90] sm:$0xff] %vm566_vm1, %v520_v43 }
  0xba   : > { %587 = vst.msk [vmem:[%s909_s25 + $0xa0] sm:$0xff] %vm566_vm1, %v522_v44 }
  0xbb   : > { %498 = vadd.xlane.f32.xlu0 %v497_v46  ;;  %586 = vst.msk [vmem:[%s909_s25 + $0x98] sm:$0xff] %vm566_vm1, %v521_v47 }
  0xbe   : > { %v373_v0 = vpop.xlane.xlu0 %372  ;;  %v376_v51 = vpop.xlane.xlu1 %375 }
  0xbf   : > { %v379_v48 = vpop.xlane.xlu2 %378  ;;  %v523_v49 = vadd.f32 %v899_v13, %v373_v0  ;;  %v524_v52 = vadd.f32 %v899_v13, %v376_v51 }
  0xc0   : > { %v525_v50 = vadd.f32 %v899_v13, %v379_v48 }
  0xc1   : > { %588 = vst.msk [vmem:[%s909_s25 + $0xa8] sm:$0xff] %vm566_vm1, %v523_v49 }
  0xc2   : > { %590 = vst.msk [vmem:[%s909_s25 + $0xb8] sm:$0xff] %vm566_vm1, %v525_v50 }
  0xc3   : > { %589 = vst.msk [vmem:[%s909_s25 + $0xb0] sm:$0xff] %vm566_vm1, %v524_v52 }
  0xc6   : > { %v382_v53 = vpop.xlane.xlu0 %381  ;;  %v385_v57 = vpop.xlane.xlu1 %384 }
  0xc7   : > { %v388_v54 = vpop.xlane.xlu2 %387  ;;  %v526_v55 = vadd.f32 %v899_v13, %v382_v53  ;;  %v527_v58 = vadd.f32 %v899_v13, %v385_v57 }
  0xc8   : > { %v528_v56 = vadd.f32 %v899_v13, %v388_v54 }
  0xc9   : > { %591 = vst.msk [vmem:[%s909_s25 + $0xc0] sm:$0xff] %vm566_vm1, %v526_v55 }
  0xca   : > { %593 = vst.msk [vmem:[%s909_s25 + $0xd0] sm:$0xff] %vm566_vm1, %v528_v56 }
  0xcb   : > { %592 = vst.msk [vmem:[%s909_s25 + $0xc8] sm:$0xff] %vm566_vm1, %v527_v58 }
  0xce   : > { %v391_v59 = vpop.xlane.xlu0 %390  ;;  %v394_v63 = vpop.xlane.xlu1 %393 }
  0xcf   : > { %v397_v60 = vpop.xlane.xlu2 %396  ;;  %v529_v61 = vadd.f32 %v899_v13, %v391_v59  ;;  %v530_v1 = vadd.f32 %v899_v13, %v394_v63 }
  0xd0   : > { %v531_v62 = vadd.f32 %v899_v13, %v397_v60 }
  0xd1   : > { %594 = vst.msk [vmem:[%s909_s25 + $0xd8] sm:$0xff] %vm566_vm1, %v529_v61 }
  0xd2   : > { %596 = vst.msk [vmem:[%s909_s25 + $0xe8] sm:$0xff] %vm566_vm1, %v531_v62 }
  0xd3   : > { %595 = vst.msk [vmem:[%s909_s25 + $0xe0] sm:$0xff] %vm566_vm1, %v530_v1 }
  0xd6   : > { %v400_v2 = vpop.xlane.xlu0 %399  ;;  %v403_v6 = vpop.xlane.xlu1 %402 }
  0xd7   : > { %v406_v3 = vpop.xlane.xlu2 %405  ;;  %v532_v4 = vadd.f32 %v899_v13, %v400_v2  ;;  %v533_v7 = vadd.f32 %v899_v13, %v403_v6 }
  0xd8   : > { %v534_v5 = vadd.f32 %v899_v13, %v406_v3 }
  0xd9   : > { %597 = vst.msk [vmem:[%s909_s25 + $0xf0] sm:$0xff] %vm566_vm1, %v532_v4 }
  0xda   : > { %599 = vst.msk [vmem:[%s909_s25 + $0x100] sm:$0xff] %vm566_vm1, %v534_v5 }
  0xdb   : > { %598 = vst.msk [vmem:[%s909_s25 + $0xf8] sm:$0xff] %vm566_vm1, %v533_v7 }
  0xde   : > { %v409_v8 = vpop.xlane.xlu0 %408  ;;  %v412_v12 = vpop.xlane.xlu1 %411 }
  0xdf   : > { %v415_v9 = vpop.xlane.xlu2 %414  ;;  %v535_v10 = vadd.f32 %v899_v13, %v409_v8  ;;  %v536_v14 = vadd.f32 %v899_v13, %v412_v12 }
  0xe0   : > { %v537_v11 = vadd.f32 %v899_v13, %v415_v9 }
  0xe1   : > { %600 = vst.msk [vmem:[%s909_s25 + $0x108] sm:$0xff] %vm566_vm1, %v535_v10 }
  0xe2   : > { %602 = vst.msk [vmem:[%s909_s25 + $0x118] sm:$0xff] %vm566_vm1, %v537_v11 }
  0xe3   : > { %601 = vst.msk [vmem:[%s909_s25 + $0x110] sm:$0xff] %vm566_vm1, %v536_v14 }
  0xe6   : > { %v418_v15 = vpop.xlane.xlu0 %417  ;;  %v421_v19 = vpop.xlane.xlu1 %420 }
  0xe7   : > { %v424_v16 = vpop.xlane.xlu2 %423  ;;  %v538_v17 = vadd.f32 %v899_v13, %v418_v15  ;;  %v539_v20 = vadd.f32 %v899_v13, %v421_v19 }
  0xe8   : > { %v540_v18 = vadd.f32 %v899_v13, %v424_v16 }
  0xe9   : > { %603 = vst.msk [vmem:[%s909_s25 + $0x120] sm:$0xff] %vm566_vm1, %v538_v17 }
  0xea   : > { %605 = vst.msk [vmem:[%s909_s25 + $0x130] sm:$0xff] %vm566_vm1, %v540_v18 }
  0xeb   : > { %604 = vst.msk [vmem:[%s909_s25 + $0x128] sm:$0xff] %vm566_vm1, %v539_v20 }
  0xee   : > { %v427_v21 = vpop.xlane.xlu0 %426  ;;  %v430_v25 = vpop.xlane.xlu1 %429 }
  0xef   : > { %v433_v22 = vpop.xlane.xlu2 %432  ;;  %v541_v23 = vadd.f32 %v899_v13, %v427_v21  ;;  %v542_v26 = vadd.f32 %v899_v13, %v430_v25 }
  0xf0   : > { %v543_v24 = vadd.f32 %v899_v13, %v433_v22 }
  0xf1   : > { %606 = vst.msk [vmem:[%s909_s25 + $0x138] sm:$0xff] %vm566_vm1, %v541_v23 }
  0xf2   : > { %608 = vst.msk [vmem:[%s909_s25 + $0x148] sm:$0xff] %vm566_vm1, %v543_v24 }
  0xf3   : > { %607 = vst.msk [vmem:[%s909_s25 + $0x140] sm:$0xff] %vm566_vm1, %v542_v26 }
  0xf6   : > { %v436_v27 = vpop.xlane.xlu0 %435  ;;  %v439_v31 = vpop.xlane.xlu1 %438 }
  0xf7   : > { %v442_v28 = vpop.xlane.xlu2 %441  ;;  %v544_v29 = vadd.f32 %v899_v13, %v436_v27  ;;  %v545_v32 = vadd.f32 %v899_v13, %v439_v31 }
  0xf8   : > { %v546_v30 = vadd.f32 %v899_v13, %v442_v28 }
  0xf9   : > { %609 = vst.msk [vmem:[%s909_s25 + $0x150] sm:$0xff] %vm566_vm1, %v544_v29 }
  0xfa   : > { %611 = vst.msk [vmem:[%s909_s25 + $0x160] sm:$0xff] %vm566_vm1, %v546_v30 }
  0xfb   : > { %610 = vst.msk [vmem:[%s909_s25 + $0x158] sm:$0xff] %vm566_vm1, %v545_v32 }
  0xfe   : > { %v445_v33 = vpop.xlane.xlu0 %444  ;;  %v448_v37 = vpop.xlane.xlu1 %447 }
  0xff   : > { %v451_v34 = vpop.xlane.xlu2 %450  ;;  %v547_v35 = vadd.f32 %v899_v13, %v445_v33  ;;  %v548_v38 = vadd.f32 %v899_v13, %v448_v37 }
 0x100   : > { %v549_v36 = vadd.f32 %v899_v13, %v451_v34 }
 0x101   : > { %612 = vst.msk [vmem:[%s909_s25 + $0x168] sm:$0xff] %vm566_vm1, %v547_v35 }
 0x102   : > { %614 = vst.msk [vmem:[%s909_s25 + $0x178] sm:$0xff] %vm566_vm1, %v549_v36 }
 0x103   : > { %613 = vst.msk [vmem:[%s909_s25 + $0x170] sm:$0xff] %vm566_vm1, %v548_v38 }
 0x106   : > { %v454_v39 = vpop.xlane.xlu0 %453  ;;  %v457_v43 = vpop.xlane.xlu1 %456 }
 0x107   : > { %v460_v40 = vpop.xlane.xlu2 %459  ;;  %v550_v41 = vadd.f32 %v899_v13, %v454_v39  ;;  %v551_v44 = vadd.f32 %v899_v13, %v457_v43 }
 0x108   : > { %v552_v42 = vadd.f32 %v899_v13, %v460_v40 }
 0x109   : > { %615 = vst.msk [vmem:[%s909_s25 + $0x180] sm:$0xff] %vm566_vm1, %v550_v41 }
 0x10a   : > { %617 = vst.msk [vmem:[%s909_s25 + $0x190] sm:$0xff] %vm566_vm1, %v552_v42 }
 0x10b   : > { %616 = vst.msk [vmem:[%s909_s25 + $0x188] sm:$0xff] %vm566_vm1, %v551_v44 }
 0x10e   : > { %v463_v45 = vpop.xlane.xlu0 %462  ;;  %v466_v48 = vpop.xlane.xlu1 %465 }
 0x10f   : > { %v469_v46 = vpop.xlane.xlu2 %468  ;;  %v553_v47 = vadd.f32 %v899_v13, %v463_v45  ;;  %v554_v49 = vadd.f32 %v899_v13, %v466_v48 }
 0x110   : > { %v555_v0 = vadd.f32 %v899_v13, %v469_v46 }
 0x111   : > { %618 = vst.msk [vmem:[%s909_s25 + $0x198] sm:$0xff] %vm566_vm1, %v553_v47 }
 0x112   : > { %620 = vst.msk [vmem:[%s909_s25 + $0x1a8] sm:$0xff] %vm566_vm1, %v555_v0 }
 0x113   : > { %619 = vst.msk [vmem:[%s909_s25 + $0x1a0] sm:$0xff] %vm566_vm1, %v554_v49 }
 0x116   : > { %v472_v50 = vpop.xlane.xlu0 %471  ;;  %v475_v54 = vpop.xlane.xlu1 %474 }
 0x117   : > { %v478_v51 = vpop.xlane.xlu2 %477  ;;  %v556_v52 = vadd.f32 %v899_v13, %v472_v50  ;;  %v557_v55 = vadd.f32 %v899_v13, %v475_v54 }
 0x118   : > { %v558_v53 = vadd.f32 %v899_v13, %v478_v51 }
 0x119   : > { %621 = vst.msk [vmem:[%s909_s25 + $0x1b0] sm:$0xff] %vm566_vm1, %v556_v52 }
 0x11a   : > { %623 = vst.msk [vmem:[%s909_s25 + $0x1c0] sm:$0xff] %vm566_vm1, %v558_v53 }
 0x11b   : > { %622 = vst.msk [vmem:[%s909_s25 + $0x1b8] sm:$0xff] %vm566_vm1, %v557_v55 }
 0x11e   : > { %v481_v56 = vpop.xlane.xlu0 %480  ;;  %v484_v60 = vpop.xlane.xlu1 %483 }
 0x11f   : > { %v487_v57 = vpop.xlane.xlu2 %486  ;;  %v559_v58 = vadd.f32 %v899_v13, %v481_v56  ;;  %v560_v61 = vadd.f32 %v899_v13, %v484_v60 }
 0x120   : > { %v561_v59 = vadd.f32 %v899_v13, %v487_v57 }
 0x121   : > { %624 = vst.msk [vmem:[%s909_s25 + $0x1c8] sm:$0xff] %vm566_vm1, %v559_v58 }
 0x122   : > { %626 = vst.msk [vmem:[%s909_s25 + $0x1d8] sm:$0xff] %vm566_vm1, %v561_v59 }
 0x123   : > { %625 = vst.msk [vmem:[%s909_s25 + $0x1d0] sm:$0xff] %vm566_vm1, %v560_v61 }
 0x126   : > { %v490_v62 = vpop.xlane.xlu0 %489  ;;  %v493_v3 = vpop.xlane.xlu1 %492 }
 0x127   : > { %v496_v63 = vpop.xlane.xlu2 %495  ;;  %v562_v1 = vadd.f32 %v899_v13, %v490_v62  ;;  %v563_v4 = vadd.f32 %v899_v13, %v493_v3 }
 0x128   : > { %v564_v2 = vadd.f32 %v899_v13, %v496_v63 }
 0x129   : > { %627 = vst.msk [vmem:[%s909_s25 + $0x1e0] sm:$0xff] %vm566_vm1, %v562_v1 }
 0x12a   : > { %629 = vst.msk [vmem:[%s909_s25 + $0x1f0] sm:$0xff] %vm566_vm1, %v564_v2 }
 0x12b   : > { %628 = vst.msk [vmem:[%s909_s25 + $0x1e8] sm:$0xff] %vm566_vm1, %v563_v4 }
 0x12e   : > { %v499_v5 = vpop.xlane.xlu0 %498 }
 0x12f   : > { %v565_v6 = vadd.f32 %v899_v13, %v499_v5 }
 0x131   : > { %630 = vst.msk [vmem:[%s909_s25 + $0x1f8] sm:$0xff] %vm566_vm1, %v565_v6 }
 0x132 PF: > { %s14_s14 = sadd.s32 1, %s713_s14  }
 0x133   : > { %p11_p4 = scmp.ge.s32.totalorder %s14_s14, 4  }
 0x135   :  { %13 = sbr.rel (!%p11_p4) target bundleno = 2 (0x2), region = 62 }

</bundles_post_ra>
